<compile_context>
chip_gen: v6e
topology: v6e:2x2x1
jax: 0.10.0
libtpu: 0.0.40
codegen_flags: <defaults>
</compile_context>

<pallas_src>
import jax
import jax.numpy as jnp
from jax.experimental import pallas as pl
from jax.experimental.pallas import tpu as pltpu


def channelwise_memory_kernel(x_ref, mt_ref, o_ref):
    # x_ref:  [K, T]     channels on sublanes, pixels on lanes
    # mt_ref: [Cout, K]  pre-transposed codebook (VMEM-resident across grid)
    # o_ref:  [Cout, T]
    x = x_ref[...].astype(jnp.float32)               # [K, T]

    # softmax over the channel axis (axis 0 / sublanes)
    x_max = jnp.max(x, axis=0, keepdims=True)        # [1, T]
    p = jnp.exp(x - x_max)                           # [K, T], <= 1 everywhere
    denom = jnp.sum(p, axis=0, keepdims=True)        # [1, T]
    p = p * pl.reciprocal(denom, approx=False)       # exact: keeps 1e-4 tolerance

    # y[i, t] = sum_k memory[k, i] * p[k, t]  ==  memory^T @ p
    y = jnp.dot(mt_ref[...].astype(jnp.float32), p,
                preferred_element_type=jnp.float32)  # [Cout, T]
    o_ref[...] = y.astype(o_ref.dtype)


def _pick_pixel_tile(K, Cout, HW, *, vmem_budget_bytes=12 * 1024 * 1024,
                     max_tile=16384):
    """Largest lane-dense (multiple-of-128) pixel tile fitting the VMEM budget.

    Per pixel column resident in VMEM at once (f32):
      double-buffered x block  : 2*K*4
      double-buffered out block: 2*Cout*4
      softmax temp p           : K*4
      matmul result y          : Cout*4
    """
    per_col_bytes = (3 * K + 3 * Cout) * 4
    t = min(max_tile, vmem_budget_bytes // max(per_col_bytes, 1))
    t = max(128, (t // 128) * 128)
    hw_pad = pl.cdiv(HW, 128) * 128      # no point in a tile larger than HW
    return min(t, hw_pad)


def channelwise_memory(x_nchw, memory):
    """x_nchw: [B, K, H, W], memory: [K, Cout] -> [B, Cout, H, W]"""
    B, K, H, W = x_nchw.shape
    Km, Cout = memory.shape
    assert Km == K
    HW = H * W

    T = _pick_pixel_tile(K, Cout, HW)
    num_tiles = pl.cdiv(HW, T)
    # Keep >= 2 grid steps so both v7x TensorCores get work (no-op on v5e/v6e).
    if B * num_tiles < 2 and HW > 128:
        T = max(128, pl.cdiv(pl.cdiv(HW, 2), 128) * 128)
        num_tiles = pl.cdiv(HW, T)

    x_r = x_nchw.reshape(B, K, HW)   # free reshape, keeps NCHW layout
    mem_t = memory.T                 # tiny one-time [Cout, K] transpose

    out_r = pl.pallas_call(
        channelwise_memory_kernel,
        out_shape=jax.ShapeDtypeStruct((B, Cout, HW), x_nchw.dtype),
        grid_spec=pltpu.PrefetchScalarGridSpec(
            num_scalar_prefetch=0,
            grid=(B, num_tiles),
            in_specs=[
                pl.BlockSpec((pl.Squeezed(), K, T), lambda b, t: (b, 0, t)),
                pl.BlockSpec((Cout, K), lambda b, t: (0, 0)),  # stays resident
            ],
            out_specs=pl.BlockSpec((pl.Squeezed(), Cout, T),
                                   lambda b, t: (b, 0, t)),
        ),
        compiler_params=pltpu.CompilerParams(
            dimension_semantics=("parallel", "parallel"),
            vmem_limit_bytes=32 * 1024 * 1024),
    )(x_r, mem_t)

    return out_r.reshape(B, Cout, H, W)


def channelwise_memory_ref(x_nchw, memory):
    attention = jax.nn.softmax(x_nchw, axis=1)
    return jnp.einsum('ki,bkhw->bihw', memory, attention)


if __name__ == "__main__":
    key = jax.random.PRNGKey(0)
    k_x, k_m = jax.random.split(key)

    B, K_in, C_out, H, W = 2, 32, 64, 16, 16

    x = jax.random.normal(k_x, (B, K_in, H, W), dtype=jnp.float32)
    # torch.rand -> uniform [0, 1)
    memory = jax.random.uniform(k_m, (K_in, C_out), dtype=jnp.float32)

    out = channelwise_memory(x, memory)
    out = jax.block_until_ready(out)

    ref = channelwise_memory_ref(x, memory)
    assert out.shape == (B, C_out, H, W)
    assert jnp.allclose(out, ref, atol=1e-4, rtol=1e-4), float(
        jnp.max(jnp.abs(out - ref)))

    print("KERNEL_OK")
</pallas_src>

<mosaic_0001>
module attributes {stable_mosaic.version = 11 : i64} {
  func.func @channelwise_memory_kernel(%arg0: i32, %arg1: i32, %arg2: memref<1x32x256xf32, #tpu.memory_space<vmem>>, %arg3: memref<64x32xf32, #tpu.memory_space<vmem>>, %arg4: memref<1x64x256xf32, #tpu.memory_space<vmem>>) attributes {dimension_semantics = [#tpu.dimension_semantics<parallel>, #tpu.dimension_semantics<parallel>], iteration_bounds = array<i64: 2, 1>, scalar_prefetch = 0 : i64, scratch_operands = 0 : i64, tpu.core_type = #tpu.core_type<tc>, window_params = [{transform_indices = @transform_0, window_bounds = array<i64: 1, 32, 256>}, {pipeline_mode = #tpu.pipeline_mode<synchronous>, transform_indices = @transform_1, window_bounds = array<i64: 64, 32>}, {transform_indices = @transform_2, window_bounds = array<i64: 1, 64, 256>}]} {
    %c0 = arith.constant 0 : index
    %c0_0 = arith.constant 0 : index
    %c0_1 = arith.constant 0 : index
    %0 = vector.load %arg2[%c0, %c0_0, %c0_1] : memref<1x32x256xf32, #tpu.memory_space<vmem>>, vector<1x32x256xf32>
    %1 = vector.shape_cast %0 : vector<1x32x256xf32> to vector<32x256xf32>
    %cst = arith.constant dense<0xFF800000> : vector<256xf32>
    %2 = vector.multi_reduction <maximumf>, %1, %cst [0] : vector<32x256xf32> to vector<256xf32>
    %3 = vector.shape_cast %2 : vector<256xf32> to vector<1x256xf32>
    %4 = vector.broadcast %3 : vector<1x256xf32> to vector<32x256xf32>
    %5 = arith.subf %1, %4 : vector<32x256xf32>
    %6 = math.exp %5 : vector<32x256xf32>
    %cst_2 = arith.constant dense<0.000000e+00> : vector<256xf32>
    %7 = vector.multi_reduction <add>, %6, %cst_2 [0] : vector<32x256xf32> to vector<256xf32>
    %8 = vector.shape_cast %7 : vector<256xf32> to vector<1x256xf32>
    %9 = tpu.reciprocal %8 : vector<1x256xf32> -> vector<1x256xf32>
    %10 = vector.broadcast %9 : vector<1x256xf32> to vector<32x256xf32>
    %11 = arith.mulf %6, %10 : vector<32x256xf32>
    %c0_3 = arith.constant 0 : index
    %c0_4 = arith.constant 0 : index
    %12 = vector.load %arg3[%c0_3, %c0_4] : memref<64x32xf32, #tpu.memory_space<vmem>>, vector<64x32xf32>
    %cst_5 = arith.constant dense<0.000000e+00> : vector<64x256xf32>
    %13 = tpu.matmul %12, %11, %cst_5 {dimension_numbers = #tpu.dot_dimension_numbers<[1], [0], [0], [1], [0, 0, 1, 1], [], []>} : vector<64x32xf32>, vector<32x256xf32>, vector<64x256xf32> -> vector<64x256xf32>
    %c0_6 = arith.constant 0 : index
    %c0_7 = arith.constant 0 : index
    %c0_8 = arith.constant 0 : index
    %14 = vector.load %arg4[%c0_6, %c0_7, %c0_8] : memref<1x64x256xf32, #tpu.memory_space<vmem>>, vector<1x64x256xf32>
    %15 = vector.shape_cast %14 : vector<1x64x256xf32> to vector<64x256xf32>
    %16 = vector.shape_cast %13 : vector<64x256xf32> to vector<1x64x256xf32>
    tpu.vector_store %arg4[%c0_6, %c0_7, %c0_8], %16 {strides = array<i32>} : memref<1x64x256xf32, #tpu.memory_space<vmem>>, vector<1x64x256xf32>,
    return
  }
  func.func @transform_0(%arg0: i32, %arg1: i32) -> (i32, i32, i32) {
    %c0_i32 = arith.constant 0 : i32
    %c0_i32_0 = arith.constant 0 : i32
    return %arg0, %c0_i32, %arg1 : i32, i32, i32
  }
  func.func @transform_1(%arg0: i32, %arg1: i32) -> (i32, i32) {
    %c0_i32 = arith.constant 0 : i32
    %c0_i32_0 = arith.constant 0 : i32
    %c0_i32_1 = arith.constant 0 : i32
    return %c0_i32, %c0_i32_0 : i32, i32
  }
  func.func @transform_2(%arg0: i32, %arg1: i32) -> (i32, i32, i32) {
    %c0_i32 = arith.constant 0 : i32
    %c0_i32_0 = arith.constant 0 : i32
    return %arg0, %c0_i32, %arg1 : i32, i32, i32
  }
}

</mosaic_0001>

<bundles_post_ra>
// kernel: tpu_custom_call.1
= control target key start
LH: loop header
LB: loop body
LE: loop exit
PB: predicated region body
PF: predicated region fallthrough
CT: control target
= control target key end

     0   :  { %7 = vsyncpa [#allocation3], 0  ;;  %s983_s0 = inlined_call_operand.hbm [shape: f32[2,32,256], index: 0, kind: input, shape index: {}]   ;;  %s984_s1 = inlined_call_operand.vmem [shape: f32[64,32], index: 1, kind: input, shape index: {}]   ;;  %s985_s2 = inlined_call_operand.hbm [shape: f32[2,64,256], index: 2, kind: output, shape index: {}]  }
   0x1   :  { %9 = vsyncpa [#allocation3 + $0x1], 0 }
   0x2   :  { %10 = vsyncpa [#allocation4], 0 }
   0x3   :  { %12 = vsyncpa [#allocation4 + $0x1], 0  ;;  %s777_s9 = smov 0   ;;  %s779_s10 = smov 0  }
   0x4   :  { %s781_s11 = smov 0   ;;  %s783_s12 = smov 0  }
   0x5   :  { %s785_s13 = smov 0   ;;  %s787_s14 = smov 0  }
   0x6 LB: > { %s525_s15 = sadd.s32 4294967295, %s753_s14   ;;  %s526_s16 = sadd.s32 4294967294, %s753_s14   ;;  %s753_s14 = sphi %s787_s14, %s18_s14   ;;  %s749_s13 = sphi %s785_s13, %s996_s13   ;;  %s745_s12 = sphi %s783_s12, %s995_s12   ;;  %s741_s11 = sphi %s781_s11, %s994_s11   ;;  %s737_s10 = sphi %s779_s10, %s993_s10   ;;  %s733_s9 = sphi %s777_s9, %s992_s9  }
   0x7   : > { %s30_s17 = sadd.s32 1, %s749_s13  ;;  %s39_s18 = sadd.s32 1, %s741_s11 }
   0x8   : > { %p32_p0 = scmp.ge.s32.totalorder %s30_s17, 2  ;;  %p46_p1 = scmp.ne.s32.totalorder %s741_s11, %s737_s10 }
   0x9   : > { %p47_p2 = scmp.eq.s32.totalorder %s753_s14, 0  ;;  %p52_p3 = scmp.ne.s32.totalorder %s737_s10, %s733_s9 }
   0xa   : > { %s998_s17 = smov (%p32_p0, %s30_s17), 0  ;;  %p53_p5 = scmp.eq.s32.totalorder %s525_s15, 0 }
   0xb   : > { %p818_p4 = por %p47_p2, %p46_p1  ;;  %s34_s20 = ssub.s32 %s749_s13, %s998_s17 }
   0xc   : > { %p99_p6 = scmp.eq.s32.totalorder %s525_s15, 1  ;;  %p37_p7 = scmp.eq.s32.totalorder %s34_s20, 0 }
   0xd   : > { %p824_p8 = por %p53_p5, %p52_p3  ;;  %p105_p10 = scmp.eq.s32.totalorder %s526_s16, 1 }
   0xe   : > { %p828_p9 = por %p99_p6, %p46_p1  ;;  %p570_p13 = scmp.lt.s32.totalorder %s753_s14, 2 }
   0xf   : > { %s833_s23 = scalar_select %p37_p7, %s741_s11, %s39_s18  }
  0x10   : > { %p835_p11 = por %p105_p10, %p52_p3  ;;  %s128_s25 = sand.u32 1, %s741_s11  }
  0x11   : > { %s529_s26 = sshll.u32 %s128_s25, 6  ;;  %s548_s27 = sshll.u32 %s749_s13, 10 }
  0x12   : > { %s140_s30 = scalar_lea.hbm %s983_s0, %s548_s27  ;;  %s132_s3 = scalar_lea.vmem [#allocation2], %s529_s26 }
  0x13   : > { %s141_s4 = sshll.u32 %s132_s3, 4  ;;  %p848_p0 = pnand %p570_p13, %p818_p4  ;;  %s142_s4 = int_to_ptr.vmem [resolvable:$true] %s141_s4 }
  0x14   : > { %p532_p1 = scmp.ge.s32.totalorder %s753_s14, 1  ;;  %s129_s6 = scalar_lea.sflag [#allocation3], %s128_s25 }
  0x15   : > { %p647_p2 = pneg %p848_p0  ;;  %s658_s7 = scalar_lea.vmem %s142_s4, 1024 }
  0x16   : > { %p659_p3 = scmp.ne.s32.totalorder %s142_s4, %s658_s7  ;;  %s755_s8 = smov [#allocation2]  }
  0x17   : > { %s663_s15 = sshll.u32 %s755_s8, 4  ;;  %s664_s15 = int_to_ptr.vmem [resolvable:$false] %s663_s15 }
  0x18   : > { %p661_p5 = pnand %p659_p3, %p647_p2  ;;  %s665_s16 = scalar_lea.vmem %s664_s15, 2048 }
  0x19   : > { %p666_p7 = scmp.lt.s32.totalorder %s142_s4, %s664_s15  ;;  %p667_p10 = scmp.lt.s32.totalorder %s665_s16, %s658_s7 }
  0x1a   : > { %p662_p6 = pneg %p661_p5 }
  0x1b   : > { %p668_p12 = por %p667_p10, %p666_p7 }
  0x1d   : > { %p669_p4 = pnand %p668_p12, %p662_p6 }
  0x1f   : > { %672 = shalt.err (!%p669_p4)
}
  0x20   : > { %s756_s18 = smov 256   ;;  %s757_s19 = smov 16  }
  0x21   : > { %565 = dma.hbm_to_vmem [thread:$0]  (!%p848_p0), %s140_s30, 1024, %s142_s4, %s129_s6, %s756_s18, %s756_s18, %s757_s19  }
  0x22   : > { %p149_p13 = scmp.lt.s32.totalorder %s753_s14, 3 }
  0x24   : > { %p150_p2 = pnand %p532_p1, %p149_p13 }
  0x25   : > { %s861_s20 = sand.u32 (!%p150_p2), 1, %s737_s10  }
  0x26   : > { %153 = sbr.rel (%p150_p2) target bundleno = 347 (0x15b), region = 28  ;;  %s533_s25 = sshll.u32 (!%p150_p2), %s861_s20, 6 }
  0x27   : > { %s156_s26 = scalar_lea.sflag (!%p150_p2), [#allocation3], %s861_s20  ;;  %s159_s27 = scalar_lea.vmem (!%p150_p2), [#allocation2], %s533_s25 }
  0x2b   : > { %724 = dma.done.wait (%p824_p8), %s156_s26, 1024  }
  0x2c   : > { %726 = vsyncadd (%p824_p8), %s156_s26, 4294966272  ;;  %v758_v0 = vmov 0.0   ;;  %v183_v1 = vld [vmem:[%s159_s27 + $0x8] sm:$0xff]  ;;  %v185_v2 = vld [vmem:[%s159_s27 + $0x18] sm:$0xff]  ;;  %vm268_vm0 = vcmask 261120   ;;  %s549_s28 = sshll.u32 %s745_s12, 11 }
  0x2d   : > { %357 = vmatprep.mubr.f32.mxu0 %v758_v0  ;;  %381 = vmatprep.mubr.f32.mxu1 %v758_v0  ;;  %v187_v3 = vld [vmem:[%s159_s27 + $0x28] sm:$0xff]  ;;  %v189_v4 = vld [vmem:[%s159_s27 + $0x38] sm:$0xff]  ;;  %v182_v6 = vld [vmem:[%s159_s27] sm:$0xff]  ;;  %s929_s4 = scalar_lea.hbm %s985_s2, %s549_s28  ;;  %s423_s12 = scalar_lea.sflag [#allocation4], %s861_s20 }
  0x2e   : > { %v199_v5 = vmax.f32 %v183_v1, %v187_v3  ;;  %v184_v7 = vld [vmem:[%s159_s27 + $0x10] sm:$0xff]  ;;  %v200_v8 = vmax.f32 %v185_v2, %v189_v4  ;;  %v186_v9 = vld [vmem:[%s159_s27 + $0x20] sm:$0xff]  ;;  %s759_s6 = smov [#allocation5]  }
  0x2f   : > { %v188_v10 = vld [vmem:[%s159_s27 + $0x30] sm:$0xff]  ;;  %v190_v11 = vmax.f32 %v182_v6, %v186_v9  ;;  %s534_s27 = sshll.u32 %s861_s20, 7  ;;  %s677_s7 = sshll.u32 %s759_s6, 4  ;;  %s678_s7 = int_to_ptr.vmem [resolvable:$false] %s677_s7 }
  0x30   : > { %v191_v12 = vmax.f32 %v184_v7, %v188_v10  ;;  %v201_v13 = vmax.f32 %v199_v5, %v200_v8  ;;  %s910_s21 = scalar_lea.vmem [#allocation5], %s534_s27  ;;  %s679_s8 = scalar_lea.vmem %s678_s7, 4096 }
  0x31   : > { %s438_s29 = sshll.u32 %s910_s21, 4  ;;  %s931_s29 = int_to_ptr.vmem [resolvable:$true] %s438_s29 }
  0x32   : > { %v192_v14 = vmax.f32 %v190_v11, %v191_v12  ;;  %v202_v15 = vrot.slane %v201_v13, 4  ;;  %s673_s5 = scalar_lea.vmem %s931_s29, 2048  ;;  %p680_p1 = scmp.lt.s32.totalorder %s931_s29, %s678_s7 }
  0x33   : > { %p674_p8 = scmp.ne.s32.totalorder %s931_s29, %s673_s5  ;;  %p681_p3 = scmp.lt.s32.totalorder %s679_s8, %s673_s5 }
  0x34   : > { %v193_v16 = vrot.slane %v192_v14, 4  ;;  %v203_v17 = vmax.f32 %v201_v13, %v202_v15 }
  0x35   : > { %p675_p12 = pnand %p674_p8, %p828_p9  ;;  %p682_p5 = por %p681_p3, %p680_p1 }
  0x36   : > { %v194_v18 = vmax.f32 %v192_v14, %v193_v16  ;;  %v204_v19 = vrot.slane %v203_v17, 2  ;;  %v260_v16 = vld [vmem:[%s984_s1] sm:$0xff] }
  0x37   : > { %p676_p0 = pneg %p675_p12 }
  0x38   : > { %v195_v20 = vrot.slane %v194_v18, 2  ;;  %v205_v21 = vmax.f32 %v203_v17, %v204_v19  ;;  %v264_v17 = vld [vmem:[%s984_s1 + $0x20] sm:$0xff]  ;;  %v265_v19 = vld [vmem:[%s984_s1 + $0x28] sm:$0xff] }
  0x39   : > { %p683_p6 = pnand %p682_p5, %p676_p0 }
  0x3a   : > { %v196_v22 = vmax.f32 %v194_v18, %v195_v20  ;;  %v206_v23 = vrot.slane %v205_v21, 1  ;;  %v261_v18 = vld [vmem:[%s984_s1 + $0x8] sm:$0xff]  ;;  %v262_v20 = vld [vmem:[%s984_s1 + $0x10] sm:$0xff] }
  0x3c   : > { %v197_v24 = vrot.slane %v196_v22, 1  ;;  %v207_v25 = vmax.f32 %v205_v21, %v206_v23  ;;  %v266_v21 = vld [vmem:[%s984_s1 + $0x30] sm:$0xff]  ;;  %v267_v23 = vld [vmem:[%s984_s1 + $0x38] sm:$0xff] }
  0x3e   : > { %v198_v26 = vmax.f32 %v196_v22, %v197_v24  ;;  %v209_v27 = vsub.f32 %v183_v1, %v207_v25  ;;  %v211_v28 = vsub.f32 %v185_v2, %v207_v25  ;;  %v213_v29 = vsub.f32 %v187_v3, %v207_v25  ;;  %v263_v22 = vld [vmem:[%s984_s1 + $0x18] sm:$0xff] }
  0x3f   : > { %v215_v30 = vsub.f32 %v189_v4, %v207_v25 }
  0x40   : > { %v208_v31 = vsub.f32 %v182_v6, %v198_v26  ;;  %v210_v32 = vsub.f32 %v184_v7, %v198_v26  ;;  %v218_v33 = vmul.f32 1.442695, %v209_v27  ;;  %v222_v34 = vmul.f32 1.442695, %v211_v28 }
  0x41   : > { %v226_v35 = vmul.f32 1.442695, %v213_v29  ;;  %v212_v36 = vsub.f32 %v186_v9, %v198_v26  ;;  %v230_v37 = vmul.f32 1.442695, %v215_v30  ;;  %v214_v38 = vsub.f32 %v188_v10, %v198_v26 }
  0x42   : > { %625 = vpow2.f32 %v218_v33  ;;  %v216_v39 = vmul.f32 1.442695, %v208_v31  ;;  %v220_v40 = vmul.f32 1.442695, %v210_v32 }
  0x43   : > { %627 = vpow2.f32 %v222_v34  ;;  %v224_v41 = vmul.f32 1.442695, %v212_v36  ;;  %v228_v42 = vmul.f32 1.442695, %v214_v38 }
  0x44   : > { %629 = vpow2.f32 %v226_v35 }
  0x45   : > { %631 = vpow2.f32 %v230_v37 }
  0x46   : > { %633 = vpow2.f32 %v216_v39 }
  0x47   : > { %635 = vpow2.f32 %v220_v40 }
  0x48   : > { %637 = vpow2.f32 %v224_v41 }
  0x49   : > { %639 = vpow2.f32 %v228_v42 }
  0x4f   : > { %v626_v43 = vpop.eup %625 }
  0x50   : > { %v628_v44 = vpop.eup %627 }
  0x51   : > { %v630_v45 = vpop.eup %629  ;;  %v241_v46 = vadd.f32 %v628_v44, %v626_v43 }
  0x52   : > { %v632_v47 = vpop.eup %631 }
  0x53   : > { %v634_v48 = vpop.eup %633  ;;  %v242_v49 = vadd.f32 %v630_v45, %v241_v46 }
  0x54   : > { %v636_v50 = vpop.eup %635 }
  0x55   : > { %v638_v51 = vpop.eup %637  ;;  %v243_v52 = vadd.f32 %v632_v47, %v242_v49  ;;  %v232_v53 = vadd.f32 %v636_v50, %v634_v48 }
  0x56   : > { %v640_v54 = vpop.eup %639 }
  0x57   : > { %v244_v55 = vrot.slane %v243_v52, 4  ;;  %v233_v56 = vadd.f32 %v638_v51, %v232_v53 }
  0x59   : > { %v245_v57 = vadd.f32 %v244_v55, %v243_v52  ;;  %v234_v58 = vadd.f32 %v640_v54, %v233_v56 }
  0x5b   : > { %v246_v59 = vrot.slane %v245_v57, 2  ;;  %v235_v60 = vrot.slane %v234_v58, 4 }
  0x5d   : > { %v247_v61 = vadd.f32 %v246_v59, %v245_v57  ;;  %v236_v62 = vadd.f32 %v235_v60, %v234_v58 }
  0x5f   : > { %v248_v63 = vrot.slane %v247_v61, 1  ;;  %v237_v1 = vrot.slane %v236_v62, 2 }
  0x61   : > { %v249_v2 = vadd.f32 %v248_v63, %v247_v61  ;;  %v238_v3 = vadd.f32 %v237_v1, %v236_v62 }
  0x63   : > { %641 = vrcp.f32 %v249_v2  ;;  %v239_v4 = vrot.slane %v238_v3, 1 }
  0x65   : > { %v240_v5 = vadd.f32 %v239_v4, %v238_v3 }
  0x67   : > { %643 = vrcp.f32 %v240_v5 }
  0x70   : > { %v642_v6 = vpop.eup %641 }
  0x71   : > { %v259_v7 = vmul.f32 %v642_v6, %v632_v47  ;;  %v257_v9 = vmul.f32 %v642_v6, %v630_v45  ;;  %v255_v12 = vmul.f32 %v642_v6, %v628_v44  ;;  %v253_v14 = vmul.f32 %v642_v6, %v626_v43 }
  0x73   : > { %317 = vmatprep.subr.mxu0 %v259_v7  ;;  %550 = vmatprep.subr.mxu1 %v259_v7 }
  0x74   : > { %v644_v8 = vpop.eup %643 }
  0x75   : > { %v258_v10 = vmul.f32 %v644_v8, %v640_v54  ;;  %v256_v11 = vmul.f32 %v644_v8, %v638_v51  ;;  %v254_v13 = vmul.f32 %v644_v8, %v636_v50  ;;  %v252_v15 = vmul.f32 %v644_v8, %v634_v48 }
  0x77   : > { %318 = vmatpush1.msra.mxu0 %v258_v10  ;;  %554 = vmatpush1.msra.mxu1 %v258_v10 }
  0x78   : > { %319 = vmatprep.subr.mxu0 %v257_v9  ;;  %551 = vmatprep.subr.mxu1 %v257_v9 }
  0x79   : > { %320 = vmatpush1.msra.mxu0 %v256_v11  ;;  %555 = vmatpush1.msra.mxu1 %v256_v11 }
  0x7a   : > { %321 = vmatprep.subr.mxu0 %v255_v12  ;;  %552 = vmatprep.subr.mxu1 %v255_v12 }
  0x7b   : > { %322 = vmatpush1.msra.mxu0 %v254_v13  ;;  %556 = vmatpush1.msra.mxu1 %v254_v13 }
  0x7c   : > { %323 = vmatprep.subr.mxu0 %v253_v14  ;;  %553 = vmatprep.subr.mxu1 %v253_v14 }
  0x7d   : > { %324 = vmatpush1.msra.mxu0 %v252_v15  ;;  %557 = vmatpush1.msra.mxu1 %v252_v15 }
  0x7e   : > { %535 = vmatmul.mubr.msk.f32.vlgmr.msra.gmra.mxu0 %vm268_vm0, %v260_v16  ;;  %539 = vmatmul.mubr.msk.f32.vlgmr.msra.gmra.mxu1 %vm268_vm0, %v264_v17 }
  0x7f   : > { %363 = vmatprep.mubr.f32.mxu0 %v758_v0  ;;  %387 = vmatprep.mubr.f32.mxu1 %v758_v0 }
  0x82   : > { %536 = vmatmul.mubr.msk.f32.gmra.mxu0 %vm268_vm0, %v261_v18  ;;  %540 = vmatmul.mubr.msk.f32.gmra.mxu1 %vm268_vm0, %v265_v19 }
  0x83   : > { %369 = vmatprep.mubr.f32.mxu0 %v758_v0  ;;  %393 = vmatprep.mubr.f32.mxu1 %v758_v0 }
  0x86   : > { %537 = vmatmul.mubr.msk.f32.gmra.mxu0 %vm268_vm0, %v262_v20  ;;  %541 = vmatmul.mubr.msk.f32.gmra.mxu1 %vm268_vm0, %v266_v21 }
  0x87   : > { %375 = vmatprep.mubr.f32.mxu0 %v758_v0  ;;  %399 = vmatprep.mubr.f32.mxu1 %v758_v0 }
  0x8a   : > { %538 = vmatmul.mubr.msk.f32.gmra.mxu0 %vm268_vm0, %v263_v22  ;;  %542 = vmatmul.mubr.msk.f32.gmra.mxu1 %vm268_vm0, %v267_v23 }
 0x13e   : > { %v359_v24 = vpop.f32.mrf.mxu0  ;;  %v383_v25 = vpop.f32.mrf.mxu1 }
 0x13f   : > { %406 = vst [vmem:[%s910_s21] sm:$0xff] %v359_v24  ;;  %414 = vst [vmem:[%s910_s21 + $0x40] sm:$0xff] %v383_v25 }
 0x140   : > { %v361_v0 = vpop.f32.mrf.mxu0  ;;  %v385_v26 = vpop.f32.mrf.mxu1 }
 0x141   : > { %407 = vst [vmem:[%s910_s21 + $0x8] sm:$0xff] %v361_v0  ;;  %415 = vst [vmem:[%s910_s21 + $0x48] sm:$0xff] %v385_v26 }
 0x142   : > { %v365_v27 = vpop.f32.mrf.mxu0  ;;  %v389_v28 = vpop.f32.mrf.mxu1 }
 0x143   : > { %408 = vst [vmem:[%s910_s21 + $0x10] sm:$0xff] %v365_v27  ;;  %416 = vst [vmem:[%s910_s21 + $0x50] sm:$0xff] %v389_v28 }
 0x144   : > { %v367_v29 = vpop.f32.mrf.mxu0  ;;  %v391_v30 = vpop.f32.mrf.mxu1 }
 0x145   : > { %409 = vst [vmem:[%s910_s21 + $0x18] sm:$0xff] %v367_v29  ;;  %417 = vst [vmem:[%s910_s21 + $0x58] sm:$0xff] %v391_v30 }
 0x146   : > { %v371_v31 = vpop.f32.mrf.mxu0  ;;  %v395_v32 = vpop.f32.mrf.mxu1 }
 0x147   : > { %410 = vst [vmem:[%s910_s21 + $0x20] sm:$0xff] %v371_v31  ;;  %418 = vst [vmem:[%s910_s21 + $0x60] sm:$0xff] %v395_v32 }
 0x148   : > { %v373_v33 = vpop.f32.mrf.mxu0  ;;  %v397_v34 = vpop.f32.mrf.mxu1 }
 0x149   : > { %411 = vst [vmem:[%s910_s21 + $0x28] sm:$0xff] %v373_v33  ;;  %419 = vst [vmem:[%s910_s21 + $0x68] sm:$0xff] %v397_v34 }
 0x14a   : > { %v377_v35 = vpop.f32.mrf.mxu0  ;;  %v401_v36 = vpop.f32.mrf.mxu1 }
 0x14b   : > { %412 = vst [vmem:[%s910_s21 + $0x30] sm:$0xff] %v377_v35  ;;  %420 = vst [vmem:[%s910_s21 + $0x70] sm:$0xff] %v401_v36 }
 0x14c   : > { %v379_v37 = vpop.f32.mrf.mxu0  ;;  %v403_v38 = vpop.f32.mrf.mxu1 }
 0x14d   : > { %413 = vst [vmem:[%s910_s21 + $0x38] sm:$0xff] %v379_v37  ;;  %421 = vst [vmem:[%s910_s21 + $0x78] sm:$0xff] %v403_v38 }
 0x14e   : > { %686 = shalt.err (!%p683_p6)
}
 0x14f   : > { %s687_s15 = scalar_lea.hbm %s929_s4, 2048  ;;  %s691_s19 = scalar_lea.hbm %s985_s2, 4096 }
 0x150   : > { %p688_p7 = scmp.ne.s32.totalorder %s929_s4, %s687_s15  ;;  %p692_p13 = scmp.lt.s32.totalorder %s929_s4, %s985_s2 }
 0x151   : > { %p693_p2 = scmp.lt.s32.totalorder %s691_s19, %s687_s15 }
 0x152   : > { %p689_p10 = pnand %p688_p7, %p828_p9 }
 0x153   : > { %p694_p8 = por %p693_p2, %p692_p13 }
 0x154   : > { %p690_p4 = pneg %p689_p10 }
 0x156   : > { %p695_p12 = pnand %p694_p8, %p690_p4 }
 0x158   : > { %698 = shalt.err (!%p695_p12)
}
 0x159   : > { %s760_s27 = smov 256   ;;  %s761_s21 = smov 16  }
 0x15a   : > { %560 = dma.vmem_to_hbm [thread:$0]  (%p828_p9), %s931_s29, 2048, %s929_s4, %s423_s12, %s760_s27, %s760_s27, %s761_s21  }
 0x15b PF: > { %s453_s28 = sand.u32 1, %s733_s9   ;;  %p991_p0 = scmp.ge.s32.totalorder %s753_s14, 2 }
 0x15c   : > { %s454_s30 = scalar_lea.sflag [#allocation4], %s453_s28 }
 0x15d   : > { %p567_p1 = pnand %p991_p0, %p835_p11 }
 0x15f   : > { %p568_p3 = pneg %p567_p1 }
 0x161   : > { %728 = dma.done.wait (%p568_p3), %s454_s30, 2048  }
 0x162   : > { %730 = vsyncadd (%p568_p3), %s454_s30, 4294965248  ;;  %s18_s14 = sadd.s32 1, %s753_s14   ;;  %s992_s9 = smov %s737_s10 }
 0x163   : > { %p15_p5 = scmp.ge.s32.totalorder %s18_s14, 4   ;;  %s993_s10 = smov %s741_s11 }
 0x164   : > { %s994_s11 = smov %s833_s23  ;;  %s995_s12 = smov %s749_s13 }
 0x165   : > { %s996_s13 = smov %s998_s17  ;;  %17 = sbr.rel (!%p15_p5) target bundleno = 6 (0x6), region = 73 }
 0x16a   :  { %459 = vsyncpa [#allocation3], 1 }
 0x16b   :  { %461 = vsyncpa [#allocation3 + $0x1], 1 }
 0x16c   :  { %462 = vsyncpa [#allocation4], 1 }
 0x16d   :  { %464 = vsyncpa [#allocation4 + $0x1], 1 }

</bundles_post_ra>
